<compile_context>
chip_gen: v7x
topology: tpu7x:2x2x1
jax: 0.10.0
libtpu: 0.0.40
codegen_flags: <defaults>
</compile_context>

<pallas_src>
import jax
import jax.numpy as jnp
from jax import lax
from jax.experimental import pallas as pl
from jax.experimental.pallas import tpu as pltpu

BN_EPS = 1e-5


def _round_up(a: int, b: int) -> int:
    return ((a + b - 1) // b) * b


def _choose_tiles(n, in_dim, out_dim, itemsize):
    # Lane-dense feature tile: multiple of 128; 256 matches the 2x256 MXU on
    # v6e/v7x, 128 keeps v5e / small models unpadded.
    tn = 128 if out_dim <= 128 else 256
    out_pad = _round_up(out_dim, tn)
    # N-tile: largest that fits a conservative VMEM budget (safe for v7x's
    # 64 MiB VMEM / 32 MiB default scoped limit; v5e/v6e have plenty headroom).
    tm = 512 if n >= 512 else _round_up(n, 8)
    budget = 28 * 1024 * 1024

    def fits(tm_):
        need = (2 * tm_ * in_dim * itemsize      # double-buffered x tiles
                + 2 * in_dim * tn * itemsize     # resident weight tile
                + 2 * tm_ * tn * itemsize        # streamed y output tiles
                + 8 * tn * 4)                    # stats accumulators
        return need <= budget

    while tm > 8 and not fits(tm):
        tm = max(8, tm // 2)
    n_pad = _round_up(n, tm)
    return tm, tn, n_pad, out_pad


def _matmul_stats_kernel(x_ref, w_ref, y_ref, sum_ref, sumsq_ref):
    # grid = (J over out_dim tiles, I over N tiles); I is innermost.
    i = pl.program_id(1)

    @pl.when(i == 0)
    def _():
        sum_ref[...] = jnp.zeros_like(sum_ref)
        sumsq_ref[...] = jnp.zeros_like(sumsq_ref)

    # Linear (no bias: it cancels under BatchNorm's mean subtraction).
    y = jnp.dot(x_ref[...], w_ref[...], preferred_element_type=jnp.float32)
    y_ref[...] = y.astype(y_ref.dtype)

    # Per-feature partial sums on the MXU (ones-row reduction) instead of a
    # cross-sublane jnp.mean reduction on the XLU/VPU.
    ones_row = jnp.ones((1, y.shape[0]), dtype=jnp.float32)
    sum_ref[...] += jnp.dot(ones_row, y, preferred_element_type=jnp.float32)
    sumsq_ref[...] += jnp.dot(ones_row, y * y, preferred_element_type=jnp.float32)


def _bn_relu_kernel(y_ref, scale_ref, shift_ref, o_ref):
    y = y_ref[...].astype(jnp.float32)
    out = jnp.maximum(y * scale_ref[...] + shift_ref[...], 0.0)
    o_ref[...] = out.astype(o_ref.dtype)


def linear_bn_relu(x, weight, bias, gamma, beta):
    """x: (..., in_dim); weight: (out_dim, in_dim). Returns (..., out_dim)."""
    del bias  # Additive per-feature bias cancels exactly under BatchNorm.
    in_dim = x.shape[-1]
    out_dim = weight.shape[0]
    lead_shape = x.shape[:-1]

    x_flat = x.reshape(-1, in_dim)            # torch: x.flatten(0, -2)
    n = x_flat.shape[0]

    tm, tn, n_pad, out_pad = _choose_tiles(n, in_dim, out_dim, x.dtype.itemsize)
    grid_i = n_pad // tm
    grid_j = out_pad // tn

    # Pad: zero rows contribute nothing to the (bias-free) batch statistics;
    # zero feature columns are sliced off at the end.
    x_pad = jnp.pad(x_flat, ((0, n_pad - n), (0, 0)))
    w_t = jnp.pad(weight.T.astype(x.dtype), ((0, 0), (0, out_pad - out_dim)))

    # TODO(synk): in_dim is kept as a single K block (weight tile resident in
    # VMEM); a very large in_dim would additionally require K tiling.

    # ---- Phase 1: tiled matmul + per-feature sum / sum-of-squares ----------
    y_pad, col_sum, col_sumsq = pl.pallas_call(
        _matmul_stats_kernel,
        out_shape=(
            jax.ShapeDtypeStruct((n_pad, out_pad), x.dtype),
            jax.ShapeDtypeStruct((1, out_pad), jnp.float32),
            jax.ShapeDtypeStruct((1, out_pad), jnp.float32),
        ),
        grid=(grid_j, grid_i),
        in_specs=[
            pl.BlockSpec((tm, in_dim), lambda j, i: (i, 0)),
            pl.BlockSpec((in_dim, tn), lambda j, i: (0, j)),   # resident over i
        ],
        out_specs=(
            pl.BlockSpec((tm, tn), lambda j, i: (i, j)),
            pl.BlockSpec((1, tn), lambda j, i: (0, j)),        # accumulator
            pl.BlockSpec((1, tn), lambda j, i: (0, j)),        # accumulator
        ),
        compiler_params=pltpu.CompilerParams(
            dimension_semantics=("parallel", "arbitrary"),
            vmem_limit_bytes=48 * 1024 * 1024,
        ),
    )(x_pad, w_t)

    # ---- Tiny per-feature glue (out_pad elems): fold BN affine into one FMA --
    inv_n = 1.0 / float(n)
    mean = col_sum * inv_n
    var = jnp.maximum(col_sumsq * inv_n - mean * mean, 0.0)   # biased variance
    inv_std = lax.rsqrt(var + BN_EPS)
    gamma_p = jnp.pad(gamma.astype(jnp.float32), (0, out_pad - out_dim)).reshape(1, out_pad)
    beta_p = jnp.pad(beta.astype(jnp.float32), (0, out_pad - out_dim)).reshape(1, out_pad)
    scale = gamma_p * inv_std
    shift = beta_p - mean * scale

    # ---- Phase 2: normalize + ReLU (y aliased into the output buffer) -------
    out_pad_arr = pl.pallas_call(
        _bn_relu_kernel,
        out_shape=jax.ShapeDtypeStruct((n_pad, out_pad), x.dtype),
        grid=(grid_i, grid_j),
        in_specs=[
            pl.BlockSpec((tm, tn), lambda i, j: (i, j)),
            pl.BlockSpec((1, tn), lambda i, j: (0, j)),
            pl.BlockSpec((1, tn), lambda i, j: (0, j)),
        ],
        out_specs=pl.BlockSpec((tm, tn), lambda i, j: (i, j)),
        input_output_aliases={0: 0},
        compiler_params=pltpu.CompilerParams(
            dimension_semantics=("parallel", "parallel"),
            vmem_limit_bytes=48 * 1024 * 1024,
        ),
    )(y_pad, scale, shift)

    out = out_pad_arr[:n, :out_dim]
    return out.reshape(*lead_shape, out_dim)     # torch: x.view(shape)


def reference(x, weight, bias, gamma, beta):
    y = x @ weight.T + bias
    shape = y.shape
    yf = y.reshape(-1, shape[-1])
    mean = yf.mean(0, keepdims=True)
    var = ((yf - mean) ** 2).mean(0, keepdims=True)
    yf = (yf - mean) / jnp.sqrt(var + BN_EPS) * gamma + beta
    return jnp.maximum(yf.reshape(shape), 0.0)


if __name__ == "__main__":
    # Small shapes consistent with the module: x has shape (batch, seq, in_dim).
    batch, seq, in_dim, out_dim = 2, 8, 32, 32

    key = jax.random.PRNGKey(0)
    kx, kw, kb = jax.random.split(key, 3)

    x = jax.random.normal(kx, (batch, seq, in_dim), dtype=jnp.float32)

    # nn.Linear-style U(-1/sqrt(in), 1/sqrt(in)) init; BN gamma=1, beta=0.
    bound = 1.0 / (in_dim ** 0.5)
    weight = jax.random.uniform(kw, (out_dim, in_dim), jnp.float32, -bound, bound)
    bias = jax.random.uniform(kb, (out_dim,), jnp.float32, -bound, bound)
    gamma = jnp.ones((out_dim,), jnp.float32)
    beta = jnp.zeros((out_dim,), jnp.float32)

    fused = jax.jit(linear_bn_relu)
    out = fused(x, weight, bias, gamma, beta)
    out = jax.block_until_ready(out)

    ref = reference(x, weight, bias, gamma, beta)
    assert out.shape == (batch, seq, out_dim)
    assert jnp.allclose(out, ref, atol=1e-4, rtol=1e-4), "mismatch vs reference"

    print("KERNEL_OK")
</pallas_src>

<mosaic_0001>
module attributes {stable_mosaic.version = 11 : i64} {
  func.func @_matmul_stats_kernel(%arg0: i32, %arg1: i32, %arg2: memref<16x32xf32, #tpu.memory_space<vmem>>, %arg3: memref<32x128xf32, #tpu.memory_space<vmem>>, %arg4: memref<16x128xf32, #tpu.memory_space<vmem>>, %arg5: memref<1x128xf32, #tpu.memory_space<vmem>>, %arg6: memref<1x128xf32, #tpu.memory_space<vmem>>) attributes {dimension_semantics = [#tpu.dimension_semantics<parallel>, #tpu.dimension_semantics<arbitrary>], iteration_bounds = array<i64: 1, 1>, scalar_prefetch = 0 : i64, scratch_operands = 0 : i64, tpu.core_type = #tpu.core_type<tc>, window_params = [{transform_indices = @transform_0, window_bounds = array<i64: 16, 32>}, {transform_indices = @transform_1, window_bounds = array<i64: 32, 128>}, {transform_indices = @transform_2, window_bounds = array<i64: 16, 128>}, {transform_indices = @transform_3, window_bounds = array<i64: 1, 128>}, {transform_indices = @transform_4, window_bounds = array<i64: 1, 128>}]} {
    %c0_i32 = arith.constant 0 : i32
    %0 = arith.cmpi eq, %arg1, %c0_i32 : i32
    %1 = arith.extui %0 : i1 to i32
    %c0_i32_0 = arith.constant 0 : i32
    %2 = arith.cmpi ne, %1, %c0_i32_0 : i32
    scf.if %2 {
      %cst_17 = arith.constant 0.000000e+00 : f32
      %17 = vector.broadcast %cst_17 : f32 to vector<1x128xf32>
      %c0_18 = arith.constant 0 : index
      %c0_19 = arith.constant 0 : index
      %18 = vector.load %arg5[%c0_18, %c0_19] : memref<1x128xf32, #tpu.memory_space<vmem>>, vector<1x128xf32>
      tpu.vector_store %arg5[%c0_18, %c0_19], %17 {strides = array<i32>} : memref<1x128xf32, #tpu.memory_space<vmem>>, vector<1x128xf32>,
      %cst_20 = arith.constant 0.000000e+00 : f32
      %19 = vector.broadcast %cst_20 : f32 to vector<1x128xf32>
      %c0_21 = arith.constant 0 : index
      %c0_22 = arith.constant 0 : index
      %20 = vector.load %arg6[%c0_21, %c0_22] : memref<1x128xf32, #tpu.memory_space<vmem>>, vector<1x128xf32>
      tpu.vector_store %arg6[%c0_21, %c0_22], %19 {strides = array<i32>} : memref<1x128xf32, #tpu.memory_space<vmem>>, vector<1x128xf32>,
    } else {
    }
    %c0 = arith.constant 0 : index
    %c0_1 = arith.constant 0 : index
    %3 = vector.load %arg2[%c0, %c0_1] : memref<16x32xf32, #tpu.memory_space<vmem>>, vector<16x32xf32>
    %c0_2 = arith.constant 0 : index
    %c0_3 = arith.constant 0 : index
    %4 = vector.load %arg3[%c0_2, %c0_3] : memref<32x128xf32, #tpu.memory_space<vmem>>, vector<32x128xf32>
    %cst = arith.constant dense<0.000000e+00> : vector<16x128xf32>
    %5 = tpu.matmul %3, %4, %cst {dimension_numbers = #tpu.dot_dimension_numbers<[1], [0], [0], [1], [0, 0, 1, 1], [], []>} : vector<16x32xf32>, vector<32x128xf32>, vector<16x128xf32> -> vector<16x128xf32>
    %c0_4 = arith.constant 0 : index
    %c0_5 = arith.constant 0 : index
    %6 = vector.load %arg4[%c0_4, %c0_5] : memref<16x128xf32, #tpu.memory_space<vmem>>, vector<16x128xf32>
    tpu.vector_store %arg4[%c0_4, %c0_5], %5 {strides = array<i32>} : memref<16x128xf32, #tpu.memory_space<vmem>>, vector<16x128xf32>,
    %cst_6 = arith.constant 1.000000e+00 : f32
    %7 = vector.broadcast %cst_6 : f32 to vector<1x16xf32>
    %c0_7 = arith.constant 0 : index
    %c0_8 = arith.constant 0 : index
    %8 = vector.load %arg5[%c0_7, %c0_8] : memref<1x128xf32, #tpu.memory_space<vmem>>, vector<1x128xf32>
    %cst_9 = arith.constant dense<0.000000e+00> : vector<1x128xf32>
    %9 = tpu.matmul %7, %5, %cst_9 {dimension_numbers = #tpu.dot_dimension_numbers<[1], [0], [0], [1], [0, 0, 1, 1], [], []>} : vector<1x16xf32>, vector<16x128xf32>, vector<1x128xf32> -> vector<1x128xf32>
    %10 = arith.addf %8, %9 : vector<1x128xf32>
    %c0_10 = arith.constant 0 : index
    %c0_11 = arith.constant 0 : index
    %11 = vector.load %arg5[%c0_10, %c0_11] : memref<1x128xf32, #tpu.memory_space<vmem>>, vector<1x128xf32>
    tpu.vector_store %arg5[%c0_10, %c0_11], %10 {strides = array<i32>} : memref<1x128xf32, #tpu.memory_space<vmem>>, vector<1x128xf32>,
    %c0_12 = arith.constant 0 : index
    %c0_13 = arith.constant 0 : index
    %12 = vector.load %arg6[%c0_12, %c0_13] : memref<1x128xf32, #tpu.memory_space<vmem>>, vector<1x128xf32>
    %13 = arith.mulf %5, %5 : vector<16x128xf32>
    %cst_14 = arith.constant dense<0.000000e+00> : vector<1x128xf32>
    %14 = tpu.matmul %7, %13, %cst_14 {dimension_numbers = #tpu.dot_dimension_numbers<[1], [0], [0], [1], [0, 0, 1, 1], [], []>} : vector<1x16xf32>, vector<16x128xf32>, vector<1x128xf32> -> vector<1x128xf32>
    %15 = arith.addf %12, %14 : vector<1x128xf32>
    %c0_15 = arith.constant 0 : index
    %c0_16 = arith.constant 0 : index
    %16 = vector.load %arg6[%c0_15, %c0_16] : memref<1x128xf32, #tpu.memory_space<vmem>>, vector<1x128xf32>
    tpu.vector_store %arg6[%c0_15, %c0_16], %15 {strides = array<i32>} : memref<1x128xf32, #tpu.memory_space<vmem>>, vector<1x128xf32>,
    return
  }
  func.func @transform_0(%arg0: i32, %arg1: i32) -> (i32, i32) {
    %c0_i32 = arith.constant 0 : i32
    %c0_i32_0 = arith.constant 0 : i32
    return %arg1, %c0_i32 : i32, i32
  }
  func.func @transform_1(%arg0: i32, %arg1: i32) -> (i32, i32) {
    %c0_i32 = arith.constant 0 : i32
    %c0_i32_0 = arith.constant 0 : i32
    return %c0_i32, %arg0 : i32, i32
  }
  func.func @transform_2(%arg0: i32, %arg1: i32) -> (i32, i32) {
    %c0_i32 = arith.constant 0 : i32
    return %arg1, %arg0 : i32, i32
  }
  func.func @transform_3(%arg0: i32, %arg1: i32) -> (i32, i32) {
    %c0_i32 = arith.constant 0 : i32
    %c0_i32_0 = arith.constant 0 : i32
    return %c0_i32, %arg0 : i32, i32
  }
  func.func @transform_4(%arg0: i32, %arg1: i32) -> (i32, i32) {
    %c0_i32 = arith.constant 0 : i32
    %c0_i32_0 = arith.constant 0 : i32
    return %c0_i32, %arg0 : i32, i32
  }
}

module attributes {stable_mosaic.version = 11 : i64} {
  func.func @_bn_relu_kernel(%arg0: i32, %arg1: i32, %arg2: memref<16x128xf32, #tpu.memory_space<vmem>>, %arg3: memref<1x128xf32, #tpu.memory_space<vmem>>, %arg4: memref<1x128xf32, #tpu.memory_space<vmem>>, %arg5: memref<16x128xf32, #tpu.memory_space<vmem>>) attributes {dimension_semantics = [#tpu.dimension_semantics<parallel>, #tpu.dimension_semantics<parallel>], iteration_bounds = array<i64: 1, 1>, scalar_prefetch = 0 : i64, scratch_operands = 0 : i64, tpu.core_type = #tpu.core_type<tc>, window_params = [{transform_indices = @transform_0, window_bounds = array<i64: 16, 128>}, {transform_indices = @transform_1, window_bounds = array<i64: 1, 128>}, {transform_indices = @transform_2, window_bounds = array<i64: 1, 128>}, {transform_indices = @transform_3, window_bounds = array<i64: 16, 128>}]} {
    %c0 = arith.constant 0 : index
    %c0_0 = arith.constant 0 : index
    %0 = vector.load %arg2[%c0, %c0_0] : memref<16x128xf32, #tpu.memory_space<vmem>>, vector<16x128xf32>
    %c0_1 = arith.constant 0 : index
    %c0_2 = arith.constant 0 : index
    %1 = vector.load %arg3[%c0_1, %c0_2] : memref<1x128xf32, #tpu.memory_space<vmem>>, vector<1x128xf32>
    %2 = vector.broadcast %1 : vector<1x128xf32> to vector<16x128xf32>
    %3 = arith.mulf %0, %2 : vector<16x128xf32>
    %c0_3 = arith.constant 0 : index
    %c0_4 = arith.constant 0 : index
    %4 = vector.load %arg4[%c0_3, %c0_4] : memref<1x128xf32, #tpu.memory_space<vmem>>, vector<1x128xf32>
    %5 = vector.broadcast %4 : vector<1x128xf32> to vector<16x128xf32>
    %6 = arith.addf %3, %5 : vector<16x128xf32>
    %cst = arith.constant 0.000000e+00 : f32
    %7 = vector.broadcast %cst : f32 to vector<16x128xf32>
    %8 = arith.maximumf %6, %7 : vector<16x128xf32>
    %c0_5 = arith.constant 0 : index
    %c0_6 = arith.constant 0 : index
    %9 = vector.load %arg5[%c0_5, %c0_6] : memref<16x128xf32, #tpu.memory_space<vmem>>, vector<16x128xf32>
    tpu.vector_store %arg5[%c0_5, %c0_6], %8 {strides = array<i32>} : memref<16x128xf32, #tpu.memory_space<vmem>>, vector<16x128xf32>,
    return
  }
  func.func @transform_0(%arg0: i32, %arg1: i32) -> (i32, i32) {
    %c0_i32 = arith.constant 0 : i32
    return %arg0, %arg1 : i32, i32
  }
  func.func @transform_1(%arg0: i32, %arg1: i32) -> (i32, i32) {
    %c0_i32 = arith.constant 0 : i32
    %c0_i32_0 = arith.constant 0 : i32
    return %c0_i32, %arg1 : i32, i32
  }
  func.func @transform_2(%arg0: i32, %arg1: i32) -> (i32, i32) {
    %c0_i32 = arith.constant 0 : i32
    %c0_i32_0 = arith.constant 0 : i32
    return %c0_i32, %arg1 : i32, i32
  }
  func.func @transform_3(%arg0: i32, %arg1: i32) -> (i32, i32) {
    %c0_i32 = arith.constant 0 : i32
    return %arg0, %arg1 : i32, i32
  }
}

</mosaic_0001>

<bundles_post_ra>
// kernel: linear_bn_relu.2
= control target key start
LH: loop header
LB: loop body
LE: loop exit
PB: predicated region body
PF: predicated region fallthrough
CT: control target
= control target key end

     0   :  { %vm26_vm0 = vcmask 261120   ;;  %v333_v8 = vmov 0.0|0.0   ;;  %vm334_vm1 = vmmov 0   ;;  %v335_v9 = vmov 0.0   ;;  %s406_s1 = inlined_call_operand.vmem [shape: f32[32,128], index: 1, kind: input, shape index: {}]   ;;  %s407_s0 = inlined_call_operand.vmem [shape: f32[16,32], index: 0, kind: input, shape index: {}]   ;;  %s408_s3 = inlined_call_operand.vmem [shape: f32[1,128], index: 3, kind: output, shape index: {1}]   ;;  %s409_s2 = inlined_call_operand.vmem [shape: f32[16,128], index: 2, kind: output, shape index: {0}]   ;;  %s410_s4 = inlined_call_operand.vmem [shape: f32[1,128], index: 4, kind: output, shape index: {2}]  }
   0x1   :  { %v22_v0 = vld [vmem:[%s406_s1] sm:$0xff]  ;;  %v23_v1 = vld [vmem:[%s406_s1 + $0x8] sm:$0xff]  ;;  %v24_v2 = vld [vmem:[%s406_s1 + $0x10] sm:$0xff]  ;;  %323 = vmatprep.subr.bf16.mxu1 %v333_v8  ;;  %305 = vmatprep.mubr.msk.f32.mxu1 %vm334_vm1, %v335_v9  ;;  %18 = vst [vmem:[%s408_s3] sm:$0x1] %v335_v9  ;;  %vm111_vm2 = vcmask 130048   ;;  %v336_v16 = vmov 1.0  }
   0x2   :  { %v315_v3 = vpack.c.bf16 %v23_v1, %v22_v0  ;;  %v25_v4 = vld [vmem:[%s406_s1 + $0x18] sm:$0xff]  ;;  %v20_v5 = vld [vmem:[%s407_s0] sm:$0xff]  ;;  %v21_v7 = vld [vmem:[%s407_s0 + $0x8] sm:$0xff]  ;;  %19 = vst [vmem:[%s410_s4] sm:$0x1] %v335_v9 }
   0x3   :  { %v319_v6 = vpack.c.bf16 %v25_v4, %v24_v2  ;;  %298 = vmatprep.mubr.msk.f32.mxu0 %vm26_vm0, %v20_v5 }
   0x4   :  { %316 = vmatprep.subr.bf16.mxu0 %v315_v3 }
   0x5   :  { %318 = vmatpush3.bf16.msra.mxu0 %v315_v3 }
   0x6   :  { %320 = vmatprep.subr.bf16.mxu0 %v319_v6 }
   0x8   :  { %v110_v17 = vld [vmem:[%s408_s3] sm:$0x1] }
   0x9   :  { %322 = vmatpush3.bf16.msra.mxu0 %v319_v6  ;;  %v187_v21 = vld [vmem:[%s410_s4] sm:$0x1] }
   0xc   :  { %299 = vmatmul.mubr.msk.f32.vlgmr.msra.gmra.mrb[0].mxu0 %vm26_vm0, %v21_v7 }
  0xdf   :  { %v300_v10 = vpop.f32.mrb[0].mxu0 }
  0xe0   :  { %v189_v11 = vmul.f32 %v300_v10, %v300_v10  ;;  %v99_v12 = vpop.f32.mrb[1].mxu0  ;;  %109 = vst [vmem:[%s409_s2 + $0x8] sm:$0xff] %v300_v10 }
  0xe1   :  { %108 = vst [vmem:[%s409_s2] sm:$0xff] %v99_v12  ;;  %v188_v13 = vmul.f32 %v99_v12, %v99_v12  ;;  %v324_v14 = vpack.c.bf16 %v300_v10, %v99_v12 }
  0xe3   :  { %v327_v15 = vpack.c.bf16 %v189_v11, %v188_v13  ;;  %325 = vmatpush3.bf16.msra.mxu1 %v324_v14 }
  0xe4   :  { %326 = vmatprep.subr.bf16.mxu1 %v333_v8 }
  0xe6   :  { %306 = vmatmul.mubr.msk.f32.vlgmr.msra.gmra.mrb[0].mxu1 %vm111_vm2, %v336_v16 }
  0xe7   :  { %328 = vmatpush3.bf16.msra.mxu1 %v327_v15  ;;  %312 = vmatprep.mubr.msk.f32.mxu1 %vm334_vm1, %v335_v9 }
  0xea   :  { %313 = vmatmul.mubr.msk.f32.vlgmr.msra.gmra.mrb[2].mxu1 %vm111_vm2, %v336_v16 }
 0x1b9   :  { %v181_v18 = vpop.f32.mrb[0].mxu1 }
 0x1ba   :  { %v185_v19 = vadd.f32 %v181_v18, %v110_v17  ;;  %v307_v20 = vpop.f32.mrb[1].mxu1 }
 0x1bc   :  { %186 = vst [vmem:[%s408_s3] sm:$0x1] %v185_v19 }
 0x1bd   :  { %v256_v22 = vpop.f32.mrb[2].mxu1 }
 0x1be   :  { %v260_v23 = vadd.f32 %v256_v22, %v187_v21  ;;  %v314_v24 = vpop.f32.mrb[3].mxu1 }
 0x1c0   :  { %261 = vst [vmem:[%s410_s4] sm:$0x1] %v260_v23 }

// kernel: linear_bn_relu.3
= control target key start
LH: loop header
LB: loop body
LE: loop exit
PB: predicated region body
PF: predicated region fallthrough
CT: control target
= control target key end

     0   :  { %s82_s0 = inlined_call_operand.vmem [shape: f32[16,128], index: 0, kind: input, shape index: {}, may-alias: {0,3}]   ;;  %s83_s1 = inlined_call_operand.vmem [shape: f32[1,128], index: 1, kind: input, shape index: {}]   ;;  %s84_s2 = inlined_call_operand.vmem [shape: f32[1,128], index: 2, kind: input, shape index: {}]   ;;  %s85_s3 = inlined_call_operand.vmem [shape: f32[16,128], index: 3, kind: output, shape index: {}, may-alias: {0,3}]  }
   0x1   :  { %v14_v0 = vld [vmem:[%s82_s0] sm:$0xff]  ;;  %v15_v4 = vld [vmem:[%s82_s0 + $0x8] sm:$0xff] }
   0x2   :  { %v42_v1 = vld [vmem:[%s83_s1] ss:$0 sm:$0xff] }
   0x3   :  { %v43_v2 = vld [vmem:[%s84_s2] ss:$0 sm:$0xff]  ;;  %v23_v3 = vmul.f32 %v42_v1, %v14_v0  ;;  %v24_v5 = vmul.f32 %v42_v1, %v15_v4 }
   0x5   :  { %v32_v6 = vadd.f32 %v43_v2, %v23_v3  ;;  %v33_v7 = vadd.f32 %v43_v2, %v24_v5 }
   0x7   :  { %v34_v8 = vmax.f32 %v32_v6, 0.0  ;;  %v35_v9 = vmax.f32 %v33_v7, 0.0 }
   0x9   :  { %36 = vst [vmem:[%s85_s3] sm:$0xff] %v34_v8  ;;  %37 = vst [vmem:[%s85_s3 + $0x8] sm:$0xff] %v35_v9 }

</bundles_post_ra>
